<compile_context>
chip_gen: v7x
topology: tpu7x:2x2x1
jax: 0.10.0
libtpu: 0.0.40
codegen_flags: <defaults>
</compile_context>

<pallas_src>
import jax
import jax.numpy as jnp
from jax.experimental import pallas as pl
from jax.experimental.pallas import tpu as pltpu


# ----------------------------------------------------------------------------
# Kernels
# ----------------------------------------------------------------------------
def _cruncher_fused_kernel(x_ref, w_ref, wf_ref, o_ref):
    # x_ref:  [TB, D]    f32 input batch tile
    # w_ref:  [L, D, D]  bf16 full hidden-weight stack (resident in VMEM)
    # wf_ref: [1, D]     f32 final projection weight (lane-dense row)
    # o_ref:  [TB, 1]    f32 output tile
    n_layers = w_ref.shape[0]
    act = x_ref[...]  # f32, carried between layers (matches bf16-chain ref)
    for l in range(n_layers):  # static L -> fully unrolled, static w_ref slices
        act = jnp.dot(
            act.astype(jnp.bfloat16), w_ref[l], preferred_element_type=jnp.float32
        )
    # Final D->1 projection: VPU multiply + lane (XLU) reduction.
    o_ref[...] = jnp.sum(act * wf_ref[...], axis=-1, keepdims=True)


def _cruncher_streamed_kernel(x_ref, w_ref, wf_ref, o_ref, act_ref):
    # x_ref:   [TB, D]  f32 input batch tile
    # w_ref:   [D, D]   bf16 current hidden-layer weight (leading dim squeezed)
    # wf_ref:  [1, D]   f32 final projection weight
    # o_ref:   [TB, 1]  f32 output tile
    # act_ref: [TB, D]  bf16 VMEM scratch: activation carried across layers
    l = pl.program_id(1)
    n_layers = pl.num_programs(1)

    @pl.when(l == 0)
    def _():
        act_ref[...] = x_ref[...].astype(jnp.bfloat16)

    # bf16 operands on the MXU, f32 accumulation.
    res_f32 = jnp.dot(act_ref[...], w_ref[...], preferred_element_type=jnp.float32)

    @pl.when(l < n_layers - 1)
    def _():
        act_ref[...] = res_f32.astype(jnp.bfloat16)

    @pl.when(l == n_layers - 1)
    def _():
        # Keep the last hidden layer's output in f32 for the projection so the
        # rounding matches the bf16-chain reference.
        o_ref[...] = jnp.sum(res_f32 * wf_ref[...], axis=-1, keepdims=True)


# ----------------------------------------------------------------------------
# Wrapper
# ----------------------------------------------------------------------------
def _vmem_capacity_bytes():
    """Generation-aware physical VMEM capacity (falls back to v7x's 64 MiB)."""
    try:
        info = pltpu.get_tpu_info()
        cap = getattr(info, "vmem_capacity_bytes", None)
        if cap:
            return int(cap)
    except Exception:
        pass
    return 64 * 1024 * 1024  # conservative: v7x per-TensorCore VMEM


def cruncher_forward(x, layer_weights, final_weight, *, force_streamed=False):
    """x: [B, D] f32, layer_weights: [L, D, D], final_weight: [D, 1] -> [B] f32."""
    B, D = x.shape
    L = layer_weights.shape[0]
    assert L >= 1

    x = x.astype(jnp.float32)
    # bf16 weights (MXU operand dtype) are produced OUTSIDE the kernel.
    w_bf16 = layer_weights.astype(jnp.bfloat16)
    wf_row = final_weight.astype(jnp.float32).reshape(1, D)  # lane-dense row

    budget = int(0.9 * _vmem_capacity_bytes())
    ws_bytes = L * D * D * 2  # bf16 weight stack

    # Fused path if the (default double-buffered) resident weight stack leaves
    # comfortable room for batch tiles; otherwise stream one layer per step.
    fused_fixed = 2 * ws_bytes + 2 * D * 4  # weight stack + wf (x2 buffering)
    use_fused = (not force_streamed) and (fused_fixed <= (budget * 3) // 5)

    if use_fused:
        # per batch row: x (double-buffered f32) + f32 act working set + out.
        per_row = 2 * D * 4 + 2 * D * 4 + 2 * 4
        max_tb = max(8, ((budget - fused_fixed) // per_row) // 8 * 8)
        max_tb = min(max_tb, 1024)
        fixed = fused_fixed
    else:
        # per step: one (D,D) bf16 weight double-buffered + wf.
        fixed = 2 * (D * D * 2) + 2 * D * 4
        # per batch row: x (double-buffered f32) + bf16 act scratch + out.
        per_row = 2 * D * 4 + D * 2 + 2 * 4
        max_tb = max(8, ((budget - fixed) // per_row) // 8 * 8)
        max_tb = min(max_tb, 2048)

    if B <= max_tb:
        TB, n_btiles, B_pad = B, 1, B
        if use_fused and B >= 256 and B % 16 == 0:
            # Weights stay resident across batch tiles in the fused path, so
            # splitting is free HBM-wise and feeds v7x's second TensorCore.
            TB, n_btiles = B // 2, 2
    else:
        TB = max_tb
        n_btiles = -(-B // TB)  # cdiv
        B_pad = n_btiles * TB

    x_padded = x if B_pad == B else jnp.pad(x, ((0, B_pad - B), (0, 0)))

    need = fixed + TB * per_row + (1 << 20)
    vmem_limit = int(min(max(int(need * 1.25), 32 * 1024 * 1024), budget))

    if use_fused:
        out = pl.pallas_call(
            _cruncher_fused_kernel,
            out_shape=jax.ShapeDtypeStruct((B_pad, 1), jnp.float32),
            grid_spec=pltpu.PrefetchScalarGridSpec(
                num_scalar_prefetch=0,
                grid=(n_btiles,),
                in_specs=[
                    pl.BlockSpec((TB, D), lambda b: (b, 0)),       # x batch tile
                    pl.BlockSpec((L, D, D), lambda b: (0, 0, 0)),  # full weight stack
                    pl.BlockSpec((1, D), lambda b: (0, 0)),        # final weight row
                ],
                out_specs=pl.BlockSpec((TB, 1), lambda b: (b, 0)),
            ),
            compiler_params=pltpu.CompilerParams(
                dimension_semantics=("parallel",),
                vmem_limit_bytes=vmem_limit,
            ),
        )(x_padded, w_bf16, wf_row)
    else:
        out = pl.pallas_call(
            _cruncher_streamed_kernel,
            out_shape=jax.ShapeDtypeStruct((B_pad, 1), jnp.float32),
            grid_spec=pltpu.PrefetchScalarGridSpec(
                num_scalar_prefetch=0,
                grid=(n_btiles, L),
                in_specs=[
                    pl.BlockSpec((TB, D), lambda b, l: (b, 0)),          # x batch tile
                    pl.BlockSpec((None, D, D), lambda b, l: (l, 0, 0)),  # layer l weight
                    pl.BlockSpec((1, D), lambda b, l: (0, 0)),           # final weight
                ],
                out_specs=pl.BlockSpec((TB, 1), lambda b, l: (b, 0)),
                scratch_shapes=[pltpu.VMEM((TB, D), jnp.bfloat16)],      # bf16 act carry
            ),
            compiler_params=pltpu.CompilerParams(
                dimension_semantics=("parallel", "arbitrary"),
                vmem_limit_bytes=vmem_limit,
            ),
        )(x_padded, w_bf16, wf_row)

    return out[:B, 0]  # squeeze(-1): [B, 1] -> [B]


def init_cruncher_params(key, dim, num_layers):
    """Deterministic init matching Linear: randn(in, out) / sqrt(in)."""
    keys = jax.random.split(key, num_layers + 1)
    layer_ws = jnp.stack(
        [
            jax.random.normal(keys[i], (dim, dim), dtype=jnp.float32)
            / jnp.sqrt(jnp.float32(dim))
            for i in range(num_layers)
        ],
        axis=0,
    )  # [L, D, D]
    final_w = jax.random.normal(keys[num_layers], (dim, 1), dtype=jnp.float32) / jnp.sqrt(
        jnp.float32(dim)
    )  # [D, 1]
    return layer_ws, final_w


if __name__ == "__main__":
    B, D, L = 8, 32, 3  # batch, hidden dim, num_layers

    key = jax.random.PRNGKey(0)
    k_x, k_p = jax.random.split(key)
    x = jax.random.normal(k_x, (B, D), dtype=jnp.float32)
    layer_ws, final_w = init_cruncher_params(k_p, D, L)

    # Fused (default) path.
    out = cruncher_forward(x, layer_ws, final_w)
    out = jax.block_until_ready(out)
    assert out.shape == (B,)

    # Streamed fallback path (exercised explicitly to keep it validated).
    out_streamed = cruncher_forward(x, layer_ws, final_w, force_streamed=True)
    out_streamed = jax.block_until_ready(out_streamed)
    assert out_streamed.shape == (B,)
    assert jnp.allclose(out, out_streamed, atol=1e-5, rtol=1e-5)

    # Reference 1: same bf16-chain math in pure JAX (tight tolerance).
    ref_act = x.astype(jnp.float32)
    for l in range(L):
        ref_act = jnp.dot(
            ref_act.astype(jnp.bfloat16),
            layer_ws[l].astype(jnp.bfloat16),
            preferred_element_type=jnp.float32,
        )
    ref_bf16 = jnp.sum(ref_act * final_w[:, 0][None, :], axis=-1)
    assert jnp.allclose(out, ref_bf16, atol=1e-3, rtol=1e-3)

    # Reference 2: full-f32 reference (loose tolerance for bf16 hidden chain).
    ref = x
    for l in range(L):
        ref = ref @ layer_ws[l]
    ref = (ref @ final_w)[:, 0]
    assert jnp.allclose(out, ref, atol=1e-1, rtol=1e-1)

    print("KERNEL_OK")
</pallas_src>

<mosaic_0001>
module attributes {stable_mosaic.version = 11 : i64} {
  func.func @_cruncher_fused_kernel(%arg0: i32, %arg1: memref<8x32xf32, #tpu.memory_space<vmem>>, %arg2: memref<3x32x32xbf16, #tpu.memory_space<vmem>>, %arg3: memref<1x32xf32, #tpu.memory_space<vmem>>, %arg4: memref<8x1xf32, #tpu.memory_space<vmem>>) attributes {dimension_semantics = [#tpu.dimension_semantics<parallel>], iteration_bounds = array<i64: 1>, scalar_prefetch = 0 : i64, scratch_operands = 0 : i64, tpu.core_type = #tpu.core_type<tc>, window_params = [{transform_indices = @transform_0, window_bounds = array<i64: 8, 32>}, {pipeline_mode = #tpu.pipeline_mode<synchronous>, transform_indices = @transform_1, window_bounds = array<i64: 3, 32, 32>}, {pipeline_mode = #tpu.pipeline_mode<synchronous>, transform_indices = @transform_2, window_bounds = array<i64: 1, 32>}, {transform_indices = @transform_3, window_bounds = array<i64: 8, 1>}]} {
    %c0 = arith.constant 0 : index
    %c0_0 = arith.constant 0 : index
    %0 = vector.load %arg1[%c0, %c0_0] : memref<8x32xf32, #tpu.memory_space<vmem>>, vector<8x32xf32>
    %1 = arith.truncf %0 : vector<8x32xf32> to vector<8x32xbf16>
    %c0_1 = arith.constant 0 : index
    %c0_2 = arith.constant 0 : index
    %c0_3 = arith.constant 0 : index
    %2 = vector.load %arg2[%c0_1, %c0_2, %c0_3] : memref<3x32x32xbf16, #tpu.memory_space<vmem>>, vector<1x32x32xbf16>
    %3 = vector.shape_cast %2 : vector<1x32x32xbf16> to vector<32x32xbf16>
    %cst = arith.constant dense<0.000000e+00> : vector<8x32xf32>
    %4 = tpu.matmul %1, %3, %cst {dimension_numbers = #tpu.dot_dimension_numbers<[1], [0], [0], [1], [0, 0, 1, 1], [], []>} : vector<8x32xbf16>, vector<32x32xbf16>, vector<8x32xf32> -> vector<8x32xf32>
    %5 = arith.truncf %4 : vector<8x32xf32> to vector<8x32xbf16>
    %c1 = arith.constant 1 : index
    %c0_4 = arith.constant 0 : index
    %c0_5 = arith.constant 0 : index
    %6 = vector.load %arg2[%c1, %c0_4, %c0_5] : memref<3x32x32xbf16, #tpu.memory_space<vmem>>, vector<1x32x32xbf16>
    %7 = vector.shape_cast %6 : vector<1x32x32xbf16> to vector<32x32xbf16>
    %cst_6 = arith.constant dense<0.000000e+00> : vector<8x32xf32>
    %8 = tpu.matmul %5, %7, %cst_6 {dimension_numbers = #tpu.dot_dimension_numbers<[1], [0], [0], [1], [0, 0, 1, 1], [], []>} : vector<8x32xbf16>, vector<32x32xbf16>, vector<8x32xf32> -> vector<8x32xf32>
    %9 = arith.truncf %8 : vector<8x32xf32> to vector<8x32xbf16>
    %c2 = arith.constant 2 : index
    %c0_7 = arith.constant 0 : index
    %c0_8 = arith.constant 0 : index
    %10 = vector.load %arg2[%c2, %c0_7, %c0_8] : memref<3x32x32xbf16, #tpu.memory_space<vmem>>, vector<1x32x32xbf16>
    %11 = vector.shape_cast %10 : vector<1x32x32xbf16> to vector<32x32xbf16>
    %cst_9 = arith.constant dense<0.000000e+00> : vector<8x32xf32>
    %12 = tpu.matmul %9, %11, %cst_9 {dimension_numbers = #tpu.dot_dimension_numbers<[1], [0], [0], [1], [0, 0, 1, 1], [], []>} : vector<8x32xbf16>, vector<32x32xbf16>, vector<8x32xf32> -> vector<8x32xf32>
    %c0_10 = arith.constant 0 : index
    %c0_11 = arith.constant 0 : index
    %13 = vector.load %arg3[%c0_10, %c0_11] : memref<1x32xf32, #tpu.memory_space<vmem>>, vector<1x32xf32>
    %14 = vector.broadcast %13 : vector<1x32xf32> to vector<8x32xf32>
    %15 = arith.mulf %12, %14 : vector<8x32xf32>
    %cst_12 = arith.constant dense<0.000000e+00> : vector<8xf32>
    %16 = vector.multi_reduction <add>, %15, %cst_12 [1] : vector<8x32xf32> to vector<8xf32>
    %17 = vector.shape_cast %16 : vector<8xf32> to vector<8x1xf32>
    %c0_13 = arith.constant 0 : index
    %c0_14 = arith.constant 0 : index
    %18 = vector.load %arg4[%c0_13, %c0_14] : memref<8x1xf32, #tpu.memory_space<vmem>>, vector<8x1xf32>
    tpu.vector_store %arg4[%c0_13, %c0_14], %17 {strides = array<i32>} : memref<8x1xf32, #tpu.memory_space<vmem>>, vector<8x1xf32>,
    return
  }
  func.func @transform_0(%arg0: i32) -> (i32, i32) {
    %c0_i32 = arith.constant 0 : i32
    %c0_i32_0 = arith.constant 0 : i32
    return %arg0, %c0_i32 : i32, i32
  }
  func.func @transform_1(%arg0: i32) -> (i32, i32, i32) {
    %c0_i32 = arith.constant 0 : i32
    %c0_i32_0 = arith.constant 0 : i32
    %c0_i32_1 = arith.constant 0 : i32
    %c0_i32_2 = arith.constant 0 : i32
    return %c0_i32, %c0_i32_0, %c0_i32_1 : i32, i32, i32
  }
  func.func @transform_2(%arg0: i32) -> (i32, i32) {
    %c0_i32 = arith.constant 0 : i32
    %c0_i32_0 = arith.constant 0 : i32
    %c0_i32_1 = arith.constant 0 : i32
    return %c0_i32, %c0_i32_0 : i32, i32
  }
  func.func @transform_3(%arg0: i32) -> (i32, i32) {
    %c0_i32 = arith.constant 0 : i32
    %c0_i32_0 = arith.constant 0 : i32
    return %arg0, %c0_i32 : i32, i32
  }
}

</mosaic_0001>

<bundles_post_ra>
// kernel: tpu_custom_call.1
= control target key start
LH: loop header
LB: loop body
LE: loop exit
PB: predicated region body
PF: predicated region fallthrough
CT: control target
= control target key end

     0   :  { %8 = vsyncpa [#allocation3], 0  ;;  %s417_s0 = inlined_call_operand.hbm [shape: f32[8,32], index: 0, kind: input, shape index: {}]   ;;  %s418_s1 = inlined_call_operand.hbm [shape: bf16[3,32,32], index: 1, kind: input, shape index: {}]   ;;  %s419_s2 = inlined_call_operand.vmem [shape: f32[1,32], index: 2, kind: input, shape index: {}]   ;;  %s420_s3 = inlined_call_operand.vmem [shape: f32[8,1], index: 3, kind: output, shape index: {}]  }
   0x1   :  { %9 = vsyncpa [#allocation5], 0  ;;  %s347_s12 = smov [#allocation2]   ;;  %s348_s14 = smov [#allocation4]  }
   0x2   :  { %s16_s13 = sshll.u32 %s347_s12, 4  ;;  %s25_s15 = sshll.u32 %s348_s14, 4  ;;  %s17_s13 = int_to_ptr.vmem [resolvable:$true] %s16_s13  ;;  %s373_s15 = int_to_ptr.vmem [resolvable:$true] %s25_s15 }
   0x3   :  { %s299_s18 = scalar_lea.hbm %s417_s0, 128 }
   0x4   :  { %p300_p0 = scmp.ne.s32.totalorder %s417_s0, %s299_s18  ;;  %p303_p1 = scmp.lt.u32.totalorder %s299_s18, %s417_s0 }
   0x6   :  { %p305_p2 = pnand %p303_p1, %p300_p0 }
   0x8   :  { %308 = shalt.err (!%p305_p2)
}
   0x9   :  { %s309_s23 = scalar_lea.vmem %s17_s13, 128  ;;  %p314_p4 = scmp.lt.s32.totalorder %s17_s13, %s17_s13 }
   0xa   :  { %p310_p3 = scmp.ne.s32.totalorder %s17_s13, %s309_s23  ;;  %p315_p5 = scmp.lt.s32.totalorder %s309_s23, %s309_s23 }
   0xc   :  { %p316_p6 = por %p315_p5, %p314_p4 }
   0xe   :  { %p317_p7 = pnand %p316_p6, %p310_p3 }
  0x10   :  { %320 = shalt.err (!%p317_p7)
}
  0x11   :  { %19 = dma.hbm_to_vmem [thread:$0]  %s417_s0, 128, %s17_s13, [#allocation3]  }
  0x12   :  { %s321_s28 = scalar_lea.hbm %s418_s1, 768 }
  0x13   :  { %p322_p8 = scmp.ne.s32.totalorder %s418_s1, %s321_s28  ;;  %p325_p9 = scmp.lt.u32.totalorder %s321_s28, %s418_s1 }
  0x15   :  { %p327_p10 = pnand %p325_p9, %p322_p8 }
  0x17   :  { %330 = shalt.err (!%p327_p10)
}
  0x18   :  { %s331_s6 = scalar_lea.vmem %s373_s15, 768  ;;  %p336_p12 = scmp.lt.s32.totalorder %s373_s15, %s373_s15 }
  0x19   :  { %p332_p11 = scmp.ne.s32.totalorder %s373_s15, %s331_s6  ;;  %p337_p13 = scmp.lt.s32.totalorder %s331_s6, %s331_s6 }
  0x1b   :  { %p338_p0 = por %p337_p13, %p336_p12 }
  0x1d   :  { %p339_p1 = pnand %p338_p0, %p332_p11 }
  0x1f   :  { %342 = shalt.err (!%p339_p1)
}
  0x20   :  { %s349_s0 = smov 64   ;;  %s350_s7 = smov 4  }
  0x21   :  { %31 = dma.hbm_to_vmem [thread:$0]  %s418_s1, 768, %s373_s15, [#allocation5], %s349_s0, %s349_s0, %s350_s7  }
  0x22   :  { %343 = dma.done.wait [#allocation3], 128  }
  0x23   :  { %344 = vsyncadd [#allocation3], 4294967168 }
  0x24   :  { %345 = dma.done.wait [#allocation5], 768  }
  0x25   :  { %346 = vsyncadd [#allocation5], 4294966528  ;;  %v351_v0 = vmov 0.0   ;;  %vm352_vm0 = vmmov 0   ;;  %v293_v1 = vld [vmem:[#allocation4] sm:$0xff]   ;;  %v294_v2 = vld [vmem:[#allocation4 + $0x8] sm:$0xff]  }
  0x26   :  { %263 = vmatprep.subr.bf16.mxu0 %v351_v0  ;;  %267 = vmatprep.mubr.msk.bf16.mxu0 %vm352_vm0, %v351_v0  ;;  %v41_v3 = vld [vmem:[#allocation2] sm:$0xff]  ;;  %v295_v4 = vld [vmem:[#allocation4 + $0x10] sm:$0xff]   ;;  %vm59_vm1 = vcmask 261120   ;;  %v297_v7 = vld [vmem:[#allocation4 + $0x20] sm:$0xff]   ;;  %vm236_vm2 = vcmask 7168  }
  0x27   :  { %271 = vmatprep.subr.bf16.mxu1 %v351_v0  ;;  %275 = vmatprep.mubr.msk.bf16.mxu1 %vm352_vm0, %v351_v0  ;;  %v42_v5 = vpack.c.bf16 %v41_v3, %v41_v3  ;;  %v296_v6 = vld [vmem:[#allocation4 + $0x18] sm:$0xff]   ;;  %v298_v8 = vld [vmem:[#allocation4 + $0x28] sm:$0xff]   ;;  %v253_v19 = vld [vmem:[%s419_s2] ss:$0 sm:$0xff] }
  0x28   :  { %264 = vmatpush3.bf16.msra.mxu0 %v293_v1  ;;  %272 = vmatpush3.bf16.msra.mxu1 %v295_v4 }
  0x29   :  { %265 = vmatprep.subr.bf16.mxu0 %v351_v0  ;;  %273 = vmatprep.subr.bf16.mxu1 %v351_v0 }
  0x2c   :  { %266 = vmatpush3.bf16.msra.mxu0 %v294_v2  ;;  %274 = vmatpush3.bf16.msra.mxu1 %v296_v6 }
  0x2d   :  { %279 = vmatprep.subr.bf16.mxu0 %v351_v0 }
  0x2f   :  { %268 = vmatmul.mubr.msk.bf16.vlgmr.msra.gmra.mrb[0].mxu0 %vm59_vm1, %v42_v5 }
  0x30   :  { %283 = vmatprep.mubr.msk.bf16.mxu0 %vm352_vm0, %v351_v0  ;;  %280 = vmatpush3.bf16.msra.mxu0 %v297_v7 }
  0x31   :  { %281 = vmatprep.subr.bf16.mxu0 %v351_v0 }
  0x34   :  { %282 = vmatpush3.bf16.msra.mxu0 %v298_v8 }
 0x102   :  { %v97_v9 = vpop.f32.mrb[0].mxu0 }
 0x103   :  { %v103_v10 = vpack.c.bf16 %v97_v9, %v97_v9  ;;  %v269_v11 = vpop.f32.mrb[1].mxu0 }
 0x104   :  { %v100_v12 = vpop.f32.mrb[2].mxu0 }
 0x105   :  { %v270_v13 = vpop.f32.mrb[3].mxu0  ;;  %276 = vmatmul.mubr.msk.bf16.vlgmr.msra.gmra.mrb[0].mxu1 %vm59_vm1, %v103_v10 }
 0x1d8   :  { %v158_v14 = vpop.f32.mrb[0].mxu1 }
 0x1d9   :  { %v164_v15 = vpack.c.bf16 %v158_v14, %v158_v14  ;;  %v277_v16 = vpop.f32.mrb[1].mxu1 }
 0x1da   :  { %v161_v17 = vpop.f32.mrb[2].mxu1 }
 0x1db   :  { %v278_v18 = vpop.f32.mrb[3].mxu1  ;;  %284 = vmatmul.mubr.msk.bf16.vlgmr.msra.gmra.mrb[4].mxu0 %vm59_vm1, %v164_v15 }
 0x2ae   :  { %v219_v20 = vpop.f32.mrb[4].mxu0 }
 0x2af   :  { %v232_v21 = vmul.f32 %v253_v19, %v219_v20  ;;  %v285_v22 = vpop.f32.mrb[5].mxu0 }
 0x2b0   :  { %v222_v23 = vpop.f32.mrb[6].mxu0 }
 0x2b1   :  { %v286_v24 = vpop.f32.mrb[7].mxu0  ;;  %v233_v25 = vsel %vm59_vm1, %v232_v21, 0.0 }
 0x2b2   :  { %234 = vadd.xlane.f32.xlu0 %v233_v25 }
 0x33f   :  { %v235_v26 = vpop.xlane.xlu0 %234 }
 0x340   :  { %237 = vst.msk [vmem:[%s420_s3] sm:$0xff] %vm236_vm2, %v235_v26 }
 0x341   :  { %242 = vsyncpa [#allocation3], 1 }
 0x342   :  { %243 = vsyncpa [#allocation5], 1 }

</bundles_post_ra>
